<compile_context>
chip_gen: v7x
topology: tpu7x:2x2x1
jax: 0.10.0
libtpu: 0.0.40
codegen_flags: <defaults>
</compile_context>

<pallas_src>
import inspect

import jax
import jax.numpy as jnp
from jax.experimental import pallas as pl
from jax.experimental.pallas import tpu as pltpu

# Budget for one grid step's multi-buffered VMEM working set (v7x-safe).
_VMEM_BLOCK_BUDGET = 16 * 1024 * 1024
# Scoped VMEM limit for the kernel (<= physical on v5e/v6e/v7x).
_VMEM_LIMIT_BYTES = 32 * 1024 * 1024


def _supports_pipeline_mode():
    try:
        return (hasattr(pl, "Buffered")
                and "pipeline_mode" in inspect.signature(pl.BlockSpec).parameters)
    except (TypeError, ValueError):
        return False


_SUPPORTS_PIPELINE_MODE = _supports_pipeline_mode()


def _cls_pool_kernel(x_ref, o_ref):
    # x_ref: [TB, TH_in] slab of the flattened [B, S*H] input whose first
    # o_ref.shape[-1] lanes are the CLS-token features of those batch rows.
    # In the 128-aligned fast path TH_in == TH_out and this is a pure copy.
    o_ref[...] = x_ref[:, : o_ref.shape[-1]]


def _sublane_align(dsize):
    # f32 -> 8, bf16/f16 -> 16, int8/fp8 -> 32 (packed-sublane vreg layout).
    return max(8, 32 // dsize)


def _pick_lane_tile_aligned(H, align_b, dsize):
    """Largest 128-multiple divisor of H (preferring H itself) whose minimal
    (align_b-row) block still fits the VMEM budget."""
    def fits(th):
        # 3 input buffers (worst case) + 2 output buffers.
        return 5 * align_b * th * dsize <= _VMEM_BLOCK_BUDGET

    for th in (H, 8192, 4096, 2048, 1024, 512, 256, 128):
        if th <= H and H % th == 0 and th % 128 == 0 and fits(th):
            return th
    return H


def _pick_lane_tile_unaligned(H, SH):
    """Smallest multiple of 128 that divides S*H and covers the first H
    columns (the CLS token) of the flattened row; else the full row."""
    start = -(-H // 128) * 128
    for th in range(start, SH, 128):
        if SH % th == 0:
            return th
    return SH


def _pick_batch_tile(B, th_in, th_out, align_b, dsize):
    def fits(tb):
        return (3 * tb * th_in + 2 * tb * th_out) * dsize <= _VMEM_BLOCK_BUDGET

    candidates = [align_b * m for m in (512, 256, 128, 64, 32, 16, 8, 4, 2, 1)]
    if align_b != 8:
        candidates += [32, 16, 8]  # still sublane-legal fallbacks
    for tb in candidates:
        if tb <= B and B % tb == 0 and fits(tb):
            return tb
    return B  # small / awkward B: full-extent sublane block is always legal


def cls_token_pooling(features, input_mask=None, *, core_parallel_batch=False):
    """Pallas TPU implementation of CLSTokenPooling.forward: features[:, 0].

    Args:
      features: [B, S, H] array (batch, sequence, hidden).
      input_mask: ignored (the PyTorch module never uses it).
      core_parallel_batch: set True on TPU v7x (2 TensorCores) to shard the
        batch grid axis across both cores; leave False on v5e/v6e.

    Returns:
      [B, H] array with the same dtype as `features`.
    """
    del input_mask
    assert features.ndim == 3, "expected [batch, seq, hidden]"
    B, S, H = features.shape
    SH = S * H
    dsize = jnp.dtype(features.dtype).itemsize
    align_b = _sublane_align(dsize)

    # Free reshape: CLS token == first H columns of each flattened row.
    flat = features.reshape(B, SH)

    if H % 128 == 0:
        th_in = th_out = _pick_lane_tile_aligned(H, align_b, dsize)
        n_j = H // th_out
        bytes_read = B * H * dsize
    else:
        # TODO(synk): for non-128-aligned H we over-read a 128-aligned prefix
        # of each row and slice [:, :H] in-kernel; an exact-H DMA would need an
        # Element-indexed gather, which is not worth it at these sizes.
        th_in = _pick_lane_tile_unaligned(H, SH)
        th_out = H
        n_j = 1
        bytes_read = B * th_in * dsize

    tb = _pick_batch_tile(B, th_in, th_out, align_b, dsize)
    n_i = B // tb
    grid = (n_i, n_j)

    index_map = lambda i, j: (i, j)  # n_j == 1 in the unaligned case, so j == 0

    in_kwargs = {}
    if _SUPPORTS_PIPELINE_MODE and n_i * n_j >= 4:
        # The CLS gather is a many-descriptor strided read (one th_in chunk per
        # batch row) -> descriptor-latency bound; a third in-flight buffer
        # hides that latency at negligible VMEM cost for these small blocks.
        in_kwargs["pipeline_mode"] = pl.Buffered(3)

    in_spec = pl.BlockSpec((tb, th_in), index_map, **in_kwargs)
    out_spec = pl.BlockSpec((tb, th_out), index_map)

    if core_parallel_batch and n_i >= 2:
        dim_sem = (pltpu.CORE_PARALLEL, pltpu.PARALLEL)
    else:
        dim_sem = ("parallel", "parallel")

    call_kwargs = dict(
        out_shape=jax.ShapeDtypeStruct((B, H), features.dtype),
        grid=grid,
        in_specs=[in_spec],
        out_specs=out_spec,
        compiler_params=pltpu.CompilerParams(
            dimension_semantics=dim_sem,
            vmem_limit_bytes=_VMEM_LIMIT_BYTES,
        ),
    )
    if hasattr(pl, "CostEstimate"):
        call_kwargs["cost_estimate"] = pl.CostEstimate(
            flops=0,
            transcendentals=0,
            bytes_accessed=int(bytes_read + B * H * dsize),
        )

    return pl.pallas_call(_cls_pool_kernel, **call_kwargs)(flat)


if __name__ == "__main__":
    key = jax.random.PRNGKey(0)

    # Primary module-consistent small shape: batch=2, seq=8, hidden=32.
    B, S, H = 2, 8, 32
    features = jax.random.normal(key, (B, S, H), dtype=jnp.float32)
    out = cls_token_pooling(features)
    jax.block_until_ready(out)
    assert out.shape == (B, H), out.shape
    assert jnp.array_equal(out, features[:, 0]), "mismatch vs features[:, 0]"

    # 128-aligned hidden with a multi-block batch grid (the optimized path).
    f2 = jax.random.normal(jax.random.PRNGKey(0), (24, 8, 256), dtype=jnp.float32)
    o2 = cls_token_pooling(f2)
    jax.block_until_ready(o2)
    assert o2.shape == (24, 256)
    assert jnp.array_equal(o2, f2[:, 0]), "mismatch vs features[:, 0] (aligned path)"

    # Sub-32-bit dtype path (packed sublanes).
    f3 = jax.random.normal(jax.random.PRNGKey(1), (16, 4, 128)).astype(jnp.bfloat16)
    o3 = cls_token_pooling(f3)
    jax.block_until_ready(o3)
    assert jnp.array_equal(o3, f3[:, 0]), "mismatch vs features[:, 0] (bf16 path)"

    print("KERNEL_OK")
</pallas_src>

<mosaic_0001>
module attributes {stable_mosaic.version = 11 : i64} {
  func.func @_cls_pool_kernel(%arg0: i32, %arg1: i32, %arg2: memref<2x128xf32, #tpu.memory_space<vmem>>, %arg3: memref<2x32xf32, #tpu.memory_space<vmem>>) attributes {dimension_semantics = [#tpu.dimension_semantics<parallel>, #tpu.dimension_semantics<parallel>], iteration_bounds = array<i64: 1, 1>, scalar_prefetch = 0 : i64, scratch_operands = 0 : i64, tpu.core_type = #tpu.core_type<tc>, window_params = [{transform_indices = @transform_0, window_bounds = array<i64: 2, 128>}, {transform_indices = @transform_1, window_bounds = array<i64: 2, 32>}]} {
    %c0 = arith.constant 0 : index
    %c0_0 = arith.constant 0 : index
    %0 = vector.load %arg2[%c0, %c0_0] : memref<2x128xf32, #tpu.memory_space<vmem>>, vector<2x32xf32>
    %c0_1 = arith.constant 0 : index
    %c0_2 = arith.constant 0 : index
    %1 = vector.load %arg3[%c0_1, %c0_2] : memref<2x32xf32, #tpu.memory_space<vmem>>, vector<2x32xf32>
    tpu.vector_store %arg3[%c0_1, %c0_2], %0 {strides = array<i32>} : memref<2x32xf32, #tpu.memory_space<vmem>>, vector<2x32xf32>,
    return
  }
  func.func @transform_0(%arg0: i32, %arg1: i32) -> (i32, i32) {
    %c0_i32 = arith.constant 0 : i32
    return %arg0, %arg1 : i32, i32
  }
  func.func @transform_1(%arg0: i32, %arg1: i32) -> (i32, i32) {
    %c0_i32 = arith.constant 0 : i32
    return %arg0, %arg1 : i32, i32
  }
}

</mosaic_0001>

<bundles_post_ra>
// kernel: tpu_custom_call.1
= control target key start
LH: loop header
LB: loop body
LE: loop exit
PB: predicated region body
PF: predicated region fallthrough
CT: control target
= control target key end

     0   :  { %6 = vsyncpa [#allocation3], 0  ;;  %s128_s0 = inlined_call_operand.hbm [shape: f32[2,256], index: 0, kind: input, shape index: {}]   ;;  %s129_s1 = inlined_call_operand.hbm [shape: f32[2,32], index: 1, kind: output, shape index: {}]  }
   0x1   :  { %7 = vsyncpa [#allocation4], 0  ;;  %s89_s6 = smov [#allocation2]   ;;  %s41_s10 = scalar_lea.hbm %s128_s0, 32 }
   0x2   :  { %s14_s7 = sshll.u32 %s89_s6, 4  ;;  %p42_p0 = scmp.ne.s32.totalorder %s128_s0, %s41_s10  ;;  %s15_s7 = int_to_ptr.vmem [resolvable:$true] %s14_s7 }
   0x3   :  { %s43_s15 = scalar_lea.hbm %s128_s0, 64  ;;  %p45_p2 = scmp.lt.u32.totalorder %s41_s10, %s128_s0 }
   0x4   :  { %p44_p1 = scmp.lt.u32.totalorder %s43_s15, %s41_s10 }
   0x6   :  { %p46_p3 = por %p45_p2, %p44_p1 }
   0x8   :  { %p47_p4 = pnand %p46_p3, %p42_p0 }
   0xa   :  { %50 = shalt.err (!%p47_p4)
}
   0xb   :  { %s51_s18 = scalar_lea.vmem %s15_s7, 32  ;;  %p56_p6 = scmp.lt.s32.totalorder %s15_s7, %s15_s7 }
   0xc   :  { %p52_p5 = scmp.ne.s32.totalorder %s15_s7, %s51_s18  ;;  %p57_p7 = scmp.lt.s32.totalorder %s51_s18, %s51_s18 }
   0xe   :  { %p58_p8 = por %p57_p7, %p56_p6 }
  0x10   :  { %p59_p9 = pnand %p58_p8, %p52_p5 }
  0x12   :  { %62 = shalt.err (!%p59_p9)
}
  0x13   :  { %17 = dma.hbm_to_vmem [thread:$0]  %s128_s0, 32, %s15_s7, [#allocation3]  }
  0x14   :  { %85 = dma.done.wait [#allocation3], 32  }
  0x15   :  { %86 = vsyncadd [#allocation3], 4294967264  ;;  %s90_s21 = smov [#allocation5]   ;;  %vm22_vm0 = vcmask 254976   ;;  %v21_v0 = vld [vmem:[#allocation2] sm:$0x3] }
  0x16   :  { %s30_s22 = sshll.u32 %s90_s21, 4  ;;  %23 = vst.msk [vmem:[#allocation5] sm:$0x3] %vm22_vm0, %v21_v0  ;;  %s31_s22 = int_to_ptr.vmem [resolvable:$true] %s30_s22 }
  0x17   :  { %s63_s23 = scalar_lea.vmem %s31_s22, 32  ;;  %p68_p11 = scmp.lt.s32.totalorder %s31_s22, %s31_s22 }
  0x18   :  { %p64_p10 = scmp.ne.s32.totalorder %s31_s22, %s63_s23  ;;  %p69_p12 = scmp.lt.s32.totalorder %s63_s23, %s63_s23 }
  0x1a   :  { %p70_p13 = por %p69_p12, %p68_p11 }
  0x1c   :  { %p71_p0 = pnand %p70_p13, %p64_p10 }
  0x1e   :  { %74 = shalt.err (!%p71_p0)
}
  0x1f   :  { %s75_s26 = scalar_lea.hbm %s129_s1, 32 }
  0x20   :  { %p76_p1 = scmp.ne.s32.totalorder %s129_s1, %s75_s26  ;;  %p79_p2 = scmp.lt.u32.totalorder %s75_s26, %s129_s1 }
  0x22   :  { %p81_p3 = pnand %p79_p2, %p76_p1 }
  0x24   :  { %84 = shalt.err (!%p81_p3)
}
  0x25   :  { %33 = dma.vmem_to_hbm [thread:$0]  %s31_s22, 32, %s129_s1, [#allocation4]  }
  0x26   :  { %87 = dma.done.wait [#allocation4], 32  }
  0x27   :  { %88 = vsyncadd [#allocation4], 4294967264 }
  0x28   :  { %37 = vsyncpa [#allocation3], 1 }
  0x29   :  { %38 = vsyncpa [#allocation4], 1 }

</bundles_post_ra>
